<compile_context>
chip_gen: v5e
topology: v5e:2x2
jax: 0.10.0
libtpu: 0.0.40
codegen_flags: <defaults>
</compile_context>

<pallas_src>
import jax
import jax.numpy as jnp
import numpy as np
from jax.experimental import pallas as pl
from jax.experimental.pallas import tpu as pltpu

C_IN = 7        # input channels
C_OUT = 8       # output channels of the synthetic 1x1-conv "model"
H = 16
W = 16
NB_DEFAULT = 1024   # max batch elements per grid step (~32 MiB double-buffered)


def _cos_zenith(time_days, lon, lat):
    """Batch-invariant cos-zenith field on the (lat, lon) meshgrid, f32 (H, W)."""
    # TODO(synk): earth2mip's cos_zenith_angle uses the full NOAA solar-position
    # algorithm on a datetime; this is a declination / hour-angle approximation
    # parameterized by fractional day-of-year (ignores the equation of time).
    lon_grid, lat_grid = jnp.meshgrid(lon, lat)           # (H, W) each
    day = jnp.floor(time_days)
    frac = time_days - day
    decl = -(23.45 * jnp.pi / 180.0) * jnp.cos(
        2.0 * jnp.pi / 365.25 * (day + 10.0))
    lat_r = lat_grid * (jnp.pi / 180.0)
    hra = (frac * 360.0 + lon_grid - 180.0) * (jnp.pi / 180.0)
    cosz = (jnp.sin(lat_r) * jnp.sin(decl)
            + jnp.cos(lat_r) * jnp.cos(decl) * jnp.cos(hra))
    return cosz.astype(jnp.float32)


def _coszen_conv_kernel(x_ref, czb_ref, w_ref, o_ref):
    # x_ref:   (nb, C_IN, HW)    input block, NCHW-major, HW on lanes
    # czb_ref: (C_OUT, HW)       grid-invariant  w_z * cosz + bias
    # w_ref:   (C_IN, C_OUT, 1)  1x1-conv weight, one (C_OUT, 1) column per in-ch
    # o_ref:   (nb, C_OUT, HW)   output block
    x = x_ref[...]
    out = czb_ref[...][None, :, :]                     # (1, C_OUT, HW)
    # Unrolled exact-f32 contraction over the C_IN=7 channels on the VPU.
    # (Channel axis sits on sublanes in this layout; an MXU dot would need an
    #  in-kernel relayout, and the kernel is DMA-bound, so this is free.)
    for c in range(C_IN):
        out = out + w_ref[c][None, :, :] * x[:, c:c + 1, :]
    o_ref[...] = out.astype(o_ref.dtype)


def cos_zen_wrapper(x, time_days, lon, lat, weight, bias, *, nb=NB_DEFAULT):
    """x: (N, C_IN, H, W) f32, time_days: () f32, lon: (W,), lat: (H,),
    weight: (C_OUT, C_IN+1), bias: (C_OUT,)."""
    n, c, h, w = x.shape
    assert c == C_IN
    hw = h * w
    assert hw % 128 == 0, "H*W must be a multiple of 128 for lane-dense blocks"

    # Hoisted, batch-invariant cos-zenith field (tiny XLA op, mirrors the numpy
    # computation in the original PyTorch module).
    cosz = _cos_zenith(time_days, lon, lat).reshape(1, hw)          # (1, HW)
    # Pre-combine the appended-channel weight column + bias, elementwise (exact
    # f32, no matmul): czb[o, k] = W[o, C_IN] * cosz[k] + b[o].
    czb = weight[:, C_IN:] * cosz + bias[:, None]                   # (C_OUT, HW)
    wt = weight[:, :C_IN].T.reshape(C_IN, C_OUT, 1)                 # (C_IN, C_OUT, 1)

    # NCHW kept end-to-end; flattening (H, W) -> HW is a free row-major view.
    x3 = x.reshape(n, C_IN, hw)

    # Block size: large blocks amortize the ~0.35 us/step pipeline overhead, but
    # keep >= 2 grid steps so both TensorCores get work on v7x.
    nb = max(1, min(nb, pl.cdiv(n, 2)))
    grid = (pl.cdiv(n, nb),)

    out = pl.pallas_call(
        _coszen_conv_kernel,
        out_shape=jax.ShapeDtypeStruct((n, C_OUT, hw), jnp.float32),
        grid_spec=pltpu.PrefetchScalarGridSpec(
            num_scalar_prefetch=0,
            grid=grid,
            in_specs=[
                pl.BlockSpec((nb, C_IN, hw), lambda i: (i, 0, 0)),    # x (NCHW blocks)
                pl.BlockSpec((C_OUT, hw), lambda i: (0, 0)),          # czb (grid-invariant)
                pl.BlockSpec((C_IN, C_OUT, 1), lambda i: (0, 0, 0)),  # conv weight
            ],
            out_specs=pl.BlockSpec((nb, C_OUT, hw), lambda i: (i, 0, 0)),
        ),
        compiler_params=pltpu.CompilerParams(
            # Batch axis is embarrassingly parallel (shards across TCs on v7x).
            dimension_semantics=("parallel",),
            # nb=1024 double-buffered is ~32 MiB; raise the scoped-VMEM limit
            # (v5e default is 16 MiB) while staying well under v7x's 64 MiB.
            vmem_limit_bytes=48 << 20,
        ),
    )(x3, czb, wt)

    return out.reshape(n, C_OUT, h, w)


def reference(x, time_days, lon, lat, weight, bias):
    """float64 numpy reference of the same forward pass (explicit concat + 1x1 conv)."""
    n, _, h, w = x.shape
    cosz = np.asarray(_cos_zenith(time_days, lon, lat), dtype=np.float64)
    z = np.broadcast_to(cosz[None, None], (n, 1, h, w))
    xin = np.concatenate([np.asarray(x, dtype=np.float64), z], axis=1)
    out = np.einsum("oc,nchw->nohw", np.asarray(weight, dtype=np.float64), xin)
    return out + np.asarray(bias, dtype=np.float64)[None, :, None, None]


if __name__ == "__main__":
    key = jax.random.PRNGKey(0)
    k1, k2, k3 = jax.random.split(key, 3)

    # NOTE: the PyTorch module's torch.cat([x, z[None, None]], dim=1) is only
    # exactly valid for batch size 1; the natural generalization (broadcast the
    # cosz channel over the batch) is used here.  N=6 with the nb=cdiv(N,2)
    # cap gives a 2-step batch grid, exercising the index_map / pipelining.
    N = 6
    x = jax.random.normal(k1, (N, C_IN, H, W), dtype=jnp.float32)
    lon = jnp.linspace(0.0, 360.0, W, endpoint=False, dtype=jnp.float32)
    lat = jnp.linspace(-90.0, 90.0, H, dtype=jnp.float32)
    time_days = jnp.float32(172.25)  # fractional day-of-year (~June 21, 06:00 UTC)

    # deterministic synthetic "model" parameters (1x1 conv over C_IN+1 channels)
    weight = jax.random.normal(k2, (C_OUT, C_IN + 1), dtype=jnp.float32) * 0.1
    bias = jax.random.normal(k3, (C_OUT,), dtype=jnp.float32) * 0.1

    out = cos_zen_wrapper(x, time_days, lon, lat, weight, bias)
    out = jax.block_until_ready(out)

    ref = reference(x, time_days, lon, lat, weight, bias)
    np.testing.assert_allclose(np.asarray(out), ref, rtol=1e-5, atol=1e-5)
    print("KERNEL_OK")
</pallas_src>

<mosaic_0001>
module attributes {stable_mosaic.version = 11 : i64} {
  func.func @_coszen_conv_kernel(%arg0: i32, %arg1: memref<3x7x256xf32, #tpu.memory_space<vmem>>, %arg2: memref<8x256xf32, #tpu.memory_space<vmem>>, %arg3: memref<7x8x1xf32, #tpu.memory_space<vmem>>, %arg4: memref<3x8x256xf32, #tpu.memory_space<vmem>>) attributes {dimension_semantics = [#tpu.dimension_semantics<parallel>], iteration_bounds = array<i64: 2>, scalar_prefetch = 0 : i64, scratch_operands = 0 : i64, tpu.core_type = #tpu.core_type<tc>, window_params = [{transform_indices = @transform_0, window_bounds = array<i64: 3, 7, 256>}, {pipeline_mode = #tpu.pipeline_mode<synchronous>, transform_indices = @transform_1, window_bounds = array<i64: 8, 256>}, {pipeline_mode = #tpu.pipeline_mode<synchronous>, transform_indices = @transform_2, window_bounds = array<i64: 7, 8, 1>}, {transform_indices = @transform_3, window_bounds = array<i64: 3, 8, 256>}]} {
    %c0 = arith.constant 0 : index
    %c0_0 = arith.constant 0 : index
    %c0_1 = arith.constant 0 : index
    %0 = vector.load %arg1[%c0, %c0_0, %c0_1] : memref<3x7x256xf32, #tpu.memory_space<vmem>>, vector<3x7x256xf32>
    %c0_2 = arith.constant 0 : index
    %c0_3 = arith.constant 0 : index
    %1 = vector.load %arg2[%c0_2, %c0_3] : memref<8x256xf32, #tpu.memory_space<vmem>>, vector<8x256xf32>
    %2 = vector.shape_cast %1 : vector<8x256xf32> to vector<1x8x256xf32>
    %c0_4 = arith.constant 0 : index
    %c0_5 = arith.constant 0 : index
    %c0_6 = arith.constant 0 : index
    %3 = vector.load %arg3[%c0_4, %c0_5, %c0_6] : memref<7x8x1xf32, #tpu.memory_space<vmem>>, vector<1x8x1xf32>
    %4 = vector.shape_cast %3 : vector<1x8x1xf32> to vector<8x1xf32>
    %5 = vector.shape_cast %4 : vector<8x1xf32> to vector<1x8x1xf32>
    %6 = vector.extract_strided_slice %0 {offsets = [0, 0, 0], sizes = [3, 1, 256], strides = [1, 1, 1]} : vector<3x7x256xf32> to vector<3x1x256xf32>
    %7 = vector.broadcast %5 : vector<1x8x1xf32> to vector<3x8x256xf32>
    %8 = vector.broadcast %6 : vector<3x1x256xf32> to vector<3x8x256xf32>
    %9 = arith.mulf %7, %8 : vector<3x8x256xf32>
    %10 = vector.broadcast %2 : vector<1x8x256xf32> to vector<3x8x256xf32>
    %11 = arith.addf %10, %9 : vector<3x8x256xf32>
    %c1 = arith.constant 1 : index
    %c0_7 = arith.constant 0 : index
    %c0_8 = arith.constant 0 : index
    %12 = vector.load %arg3[%c1, %c0_7, %c0_8] : memref<7x8x1xf32, #tpu.memory_space<vmem>>, vector<1x8x1xf32>
    %13 = vector.shape_cast %12 : vector<1x8x1xf32> to vector<8x1xf32>
    %14 = vector.shape_cast %13 : vector<8x1xf32> to vector<1x8x1xf32>
    %15 = vector.extract_strided_slice %0 {offsets = [0, 1, 0], sizes = [3, 1, 256], strides = [1, 1, 1]} : vector<3x7x256xf32> to vector<3x1x256xf32>
    %16 = vector.broadcast %14 : vector<1x8x1xf32> to vector<3x8x256xf32>
    %17 = vector.broadcast %15 : vector<3x1x256xf32> to vector<3x8x256xf32>
    %18 = arith.mulf %16, %17 : vector<3x8x256xf32>
    %19 = arith.addf %11, %18 : vector<3x8x256xf32>
    %c2 = arith.constant 2 : index
    %c0_9 = arith.constant 0 : index
    %c0_10 = arith.constant 0 : index
    %20 = vector.load %arg3[%c2, %c0_9, %c0_10] : memref<7x8x1xf32, #tpu.memory_space<vmem>>, vector<1x8x1xf32>
    %21 = vector.shape_cast %20 : vector<1x8x1xf32> to vector<8x1xf32>
    %22 = vector.shape_cast %21 : vector<8x1xf32> to vector<1x8x1xf32>
    %23 = vector.extract_strided_slice %0 {offsets = [0, 2, 0], sizes = [3, 1, 256], strides = [1, 1, 1]} : vector<3x7x256xf32> to vector<3x1x256xf32>
    %24 = vector.broadcast %22 : vector<1x8x1xf32> to vector<3x8x256xf32>
    %25 = vector.broadcast %23 : vector<3x1x256xf32> to vector<3x8x256xf32>
    %26 = arith.mulf %24, %25 : vector<3x8x256xf32>
    %27 = arith.addf %19, %26 : vector<3x8x256xf32>
    %c3 = arith.constant 3 : index
    %c0_11 = arith.constant 0 : index
    %c0_12 = arith.constant 0 : index
    %28 = vector.load %arg3[%c3, %c0_11, %c0_12] : memref<7x8x1xf32, #tpu.memory_space<vmem>>, vector<1x8x1xf32>
    %29 = vector.shape_cast %28 : vector<1x8x1xf32> to vector<8x1xf32>
    %30 = vector.shape_cast %29 : vector<8x1xf32> to vector<1x8x1xf32>
    %31 = vector.extract_strided_slice %0 {offsets = [0, 3, 0], sizes = [3, 1, 256], strides = [1, 1, 1]} : vector<3x7x256xf32> to vector<3x1x256xf32>
    %32 = vector.broadcast %30 : vector<1x8x1xf32> to vector<3x8x256xf32>
    %33 = vector.broadcast %31 : vector<3x1x256xf32> to vector<3x8x256xf32>
    %34 = arith.mulf %32, %33 : vector<3x8x256xf32>
    %35 = arith.addf %27, %34 : vector<3x8x256xf32>
    %c4 = arith.constant 4 : index
    %c0_13 = arith.constant 0 : index
    %c0_14 = arith.constant 0 : index
    %36 = vector.load %arg3[%c4, %c0_13, %c0_14] : memref<7x8x1xf32, #tpu.memory_space<vmem>>, vector<1x8x1xf32>
    %37 = vector.shape_cast %36 : vector<1x8x1xf32> to vector<8x1xf32>
    %38 = vector.shape_cast %37 : vector<8x1xf32> to vector<1x8x1xf32>
    %39 = vector.extract_strided_slice %0 {offsets = [0, 4, 0], sizes = [3, 1, 256], strides = [1, 1, 1]} : vector<3x7x256xf32> to vector<3x1x256xf32>
    %40 = vector.broadcast %38 : vector<1x8x1xf32> to vector<3x8x256xf32>
    %41 = vector.broadcast %39 : vector<3x1x256xf32> to vector<3x8x256xf32>
    %42 = arith.mulf %40, %41 : vector<3x8x256xf32>
    %43 = arith.addf %35, %42 : vector<3x8x256xf32>
    %c5 = arith.constant 5 : index
    %c0_15 = arith.constant 0 : index
    %c0_16 = arith.constant 0 : index
    %44 = vector.load %arg3[%c5, %c0_15, %c0_16] : memref<7x8x1xf32, #tpu.memory_space<vmem>>, vector<1x8x1xf32>
    %45 = vector.shape_cast %44 : vector<1x8x1xf32> to vector<8x1xf32>
    %46 = vector.shape_cast %45 : vector<8x1xf32> to vector<1x8x1xf32>
    %47 = vector.extract_strided_slice %0 {offsets = [0, 5, 0], sizes = [3, 1, 256], strides = [1, 1, 1]} : vector<3x7x256xf32> to vector<3x1x256xf32>
    %48 = vector.broadcast %46 : vector<1x8x1xf32> to vector<3x8x256xf32>
    %49 = vector.broadcast %47 : vector<3x1x256xf32> to vector<3x8x256xf32>
    %50 = arith.mulf %48, %49 : vector<3x8x256xf32>
    %51 = arith.addf %43, %50 : vector<3x8x256xf32>
    %c6 = arith.constant 6 : index
    %c0_17 = arith.constant 0 : index
    %c0_18 = arith.constant 0 : index
    %52 = vector.load %arg3[%c6, %c0_17, %c0_18] : memref<7x8x1xf32, #tpu.memory_space<vmem>>, vector<1x8x1xf32>
    %53 = vector.shape_cast %52 : vector<1x8x1xf32> to vector<8x1xf32>
    %54 = vector.shape_cast %53 : vector<8x1xf32> to vector<1x8x1xf32>
    %55 = vector.extract_strided_slice %0 {offsets = [0, 6, 0], sizes = [3, 1, 256], strides = [1, 1, 1]} : vector<3x7x256xf32> to vector<3x1x256xf32>
    %56 = vector.broadcast %54 : vector<1x8x1xf32> to vector<3x8x256xf32>
    %57 = vector.broadcast %55 : vector<3x1x256xf32> to vector<3x8x256xf32>
    %58 = arith.mulf %56, %57 : vector<3x8x256xf32>
    %59 = arith.addf %51, %58 : vector<3x8x256xf32>
    %c0_19 = arith.constant 0 : index
    %c0_20 = arith.constant 0 : index
    %c0_21 = arith.constant 0 : index
    %60 = vector.load %arg4[%c0_19, %c0_20, %c0_21] : memref<3x8x256xf32, #tpu.memory_space<vmem>>, vector<3x8x256xf32>
    tpu.vector_store %arg4[%c0_19, %c0_20, %c0_21], %59 {strides = array<i32>} : memref<3x8x256xf32, #tpu.memory_space<vmem>>, vector<3x8x256xf32>,
    return
  }
  func.func @transform_0(%arg0: i32) -> (i32, i32, i32) {
    %c0_i32 = arith.constant 0 : i32
    %c0_i32_0 = arith.constant 0 : i32
    %c0_i32_1 = arith.constant 0 : i32
    return %arg0, %c0_i32, %c0_i32_0 : i32, i32, i32
  }
  func.func @transform_1(%arg0: i32) -> (i32, i32) {
    %c0_i32 = arith.constant 0 : i32
    %c0_i32_0 = arith.constant 0 : i32
    %c0_i32_1 = arith.constant 0 : i32
    return %c0_i32, %c0_i32_0 : i32, i32
  }
  func.func @transform_2(%arg0: i32) -> (i32, i32, i32) {
    %c0_i32 = arith.constant 0 : i32
    %c0_i32_0 = arith.constant 0 : i32
    %c0_i32_1 = arith.constant 0 : i32
    %c0_i32_2 = arith.constant 0 : i32
    return %c0_i32, %c0_i32_0, %c0_i32_1 : i32, i32, i32
  }
  func.func @transform_3(%arg0: i32) -> (i32, i32, i32) {
    %c0_i32 = arith.constant 0 : i32
    %c0_i32_0 = arith.constant 0 : i32
    %c0_i32_1 = arith.constant 0 : i32
    return %arg0, %c0_i32, %c0_i32_0 : i32, i32, i32
  }
}

</mosaic_0001>

<bundles_post_ra>
// kernel: tpu_custom_call.1
= control target key start
LH: loop header
LB: loop body
LE: loop exit
PB: predicated region body
PF: predicated region fallthrough
CT: control target
= control target key end

     0   :  { %8 = vsyncpa [#allocation3], 0  ;;  %s923_s0 = inlined_call_operand.hbm [shape: f32[6,7,256], index: 0, kind: input, shape index: {}]   ;;  %s924_s1 = inlined_call_operand.vmem [shape: f32[8,256], index: 1, kind: input, shape index: {}]   ;;  %s925_s2 = inlined_call_operand.vmem [shape: f32[7,8,1], index: 2, kind: input, shape index: {}]   ;;  %s926_s3 = inlined_call_operand.hbm [shape: f32[6,8,256], index: 3, kind: output, shape index: {}]  }
   0x1   :  { %10 = vsyncpa [#allocation3 + $0x1], 0 }
   0x2   :  { %11 = vsyncpa [#allocation4], 0 }
   0x3   :  { %13 = vsyncpa [#allocation4 + $0x1], 0  ;;  %s673_s12 = smov 0   ;;  %s675_s13 = smov 0  }
   0x4   :  { %s677_s14 = smov 0   ;;  %s679_s15 = smov 0  }
   0x5 LB: > { %s694_s16 = sadd.s32 4294967295, %s646_s15   ;;  %s472_s17 = sadd.s32 4294967294, %s646_s15   ;;  %s646_s15 = sphi %s679_s15, %s939_s15   ;;  %s642_s14 = sphi %s677_s14, %s938_s14   ;;  %s638_s13 = sphi %s675_s13, %s937_s13   ;;  %s634_s12 = sphi %s673_s12, %s936_s12  }
   0x6   : > { %s698_s18 = sadd.s32 1, %s646_s15   ;;  %s26_s19 = sadd.s32 1, %s642_s14 }
   0x7   : > { %s23_s20 = ssub.s32 %s646_s15, %s698_s18  ;;  %p33_p0 = scmp.ne.s32.totalorder %s642_s14, %s638_s13 }
   0x8   : > { %p24_p1 = scmp.eq.s32.totalorder %s23_s20, 0  ;;  %p34_p2 = scmp.eq.s32.totalorder %s646_s15, 0 }
   0x9   : > { %p39_p3 = scmp.ne.s32.totalorder %s638_s13, %s634_s12  ;;  %p40_p4 = scmp.eq.s32.totalorder %s694_s16, 0 }
   0xa   : > { %s710_s21 = scalar_select %p24_p1, %s642_s14, %s26_s19  }
   0xb   : > { %p35_p5 = por %p34_p2, %p33_p0  ;;  %p712_p6 = por %p40_p4, %p39_p3 }
   0xc   : > { %p105_p7 = scmp.eq.s32.totalorder %s694_s16, 1  ;;  %p111_p8 = scmp.eq.s32.totalorder %s472_s17, 1 }
   0xd   : > { %p474_p9 = scmp.ge.s32.totalorder %s646_s15, 2  ;;  %p508_p10 = scmp.lt.s32.totalorder %s646_s15, 2 }
   0xe   : > { %p719_p11 = por %p105_p7, %p33_p0  ;;  %p723_p12 = por %p111_p8, %p39_p3 }
   0xf   : > { %s137_s25 = sand.u32 1, %s642_s14   ;;  %s492_s26 = smul.u32 48, %s646_s15 }
  0x10   : > { %s494_s27 = smul.u32 48, %s137_s25  ;;  %p732_p13 = pnand %p508_p10, %p35_p5 }
  0x11   : > { %s147_s30 = scalar_lea.hbm %s923_s0, %s492_s26  ;;  %s138_s8 = scalar_lea.sflag [#allocation3], %s137_s25 }
  0x12   : > { %s148_s5 = sshll.u32 %s147_s30, 4  ;;  %s141_s6 = scalar_lea.vmem [#allocation2], %s494_s27  ;;  %s149_s5 = int_to_ptr.hbm [resolvable:$true] %s148_s5 }
  0x13   : > { %s150_s7 = sshll.u32 %s141_s6, 4  ;;  %s550_s9 = sshra.s32 %s149_s5, 4  ;;  %s151_s7 = int_to_ptr.vmem [resolvable:$true] %s150_s7  ;;  %s551_s9 = int_to_ptr.hbm [resolvable:$true] %s550_s9 }
  0x14   : > { %s552_s10 = scalar_lea.hbm %s551_s9, 48  ;;  %p554_p1 = pneg %p732_p13 }
  0x15   : > { %p553_p0 = scmp.ne.s32.totalorder %s551_s9, %s552_s10  ;;  %s557_s19 = scalar_lea.hbm %s923_s0, 96 }
  0x16   : > { %p558_p4 = scmp.lt.s32.totalorder %s551_s9, %s923_s0  ;;  %p559_p5 = scmp.lt.s32.totalorder %s557_s19, %s552_s10 }
  0x17   : > { %p555_p2 = pnand %p554_p1, %p553_p0 }
  0x18   : > { %p560_p7 = por %p559_p5, %p558_p4 }
  0x19   : > { %p556_p3 = pneg %p555_p2 }
  0x1b   : > { %p561_p8 = pnand %p560_p7, %p556_p3 }
  0x1d   : > { %564 = shalt.err (!%p561_p8)
}
  0x1e   : > { %s648_s25 = smov 256   ;;  %s649_s27 = smov 16  }
  0x1f   : > { %503 = dma.hbm_to_vmem [thread:$0]  (!%p732_p13), %s149_s5, 768, %s151_s7, %s138_s8, %s648_s25, %s648_s25, %s649_s27  }
  0x20   : > { %p477_p10 = scmp.ge.s32.totalorder %s646_s15, 1  ;;  %p158_p0 = scmp.lt.s32.totalorder %s646_s15, 3 }
  0x22   : > { %p159_p1 = pnand %p477_p10, %p158_p0 }
  0x23   : > { %s749_s28 = sand.u32 (!%p159_p1), 1, %s638_s13  }
  0x24   : > { %162 = sbr.rel (%p159_p1) target bundleno = 191 (0xbf), region = 32  ;;  %s165_s30 = scalar_lea.sflag (!%p159_p1), [#allocation3], %s749_s28 }
  0x25   : > { %s495_s29 = smul.u32 (!%p159_p1), 48, %s749_s28 }
  0x27   : > { %s168_s6 = scalar_lea.vmem (!%p159_p1), [#allocation2], %s495_s29 }
  0x29   : > { %625 = dma.done.wait (%p712_p6), %s165_s30, 768  }
  0x2a   : > { %627 = vsyncadd (%p712_p6), %s165_s30, 4294966528  ;;  %v650_v0 = vmov 0   ;;  %v479_v1 = vld [vmem:[%s925_s2 + $0x10] sm:$0xff]  ;;  %v202_v2 = vld [vmem:[%s925_s2] sm:$0xff]  ;;  %s493_s7 = smul.u32 48, %s694_s16  ;;  %s191_s10 = scalar_lea.vmem [#allocation5], %s495_s29 }
  0x2b   : > { %548 = vset.pattern.permute.xlu1 %v650_v0  ;;  %547 = vset.pattern.permute.xlu0 %v650_v0  ;;  %v481_v3 = vld [vmem:[%s925_s2 + $0x20] sm:$0xff]  ;;  %v480_v4 = vld [vmem:[%s925_s2 + $0x18] sm:$0xff]  ;;  %v478_v5 = vld [vmem:[%s925_s2 + $0x8] sm:$0xff]  ;;  %s396_s22 = sshll.u32 %s191_s10, 4  ;;  %s383_s17 = scalar_lea.sflag [#allocation4], %s749_s28  ;;  %s397_s22 = int_to_ptr.vmem [resolvable:$true] %s396_s22 }
  0x2c   : > { %549 = vset.pattern.permute.xlu2 %v650_v0  ;;  %255 = vperm.xlu1 %548, %v479_v1   ;;  %v482_v6 = vld [vmem:[%s925_s2 + $0x28] sm:$0xff]  ;;  %v483_v7 = vld [vmem:[%s925_s2 + $0x30] sm:$0xff]  ;;  %s395_s9 = scalar_lea.hbm %s926_s3, %s493_s7  ;;  %s600_s25 = scalar_lea.hbm %s926_s3, 96 }
  0x2d   : > { %205 = vperm.xlu0 %547, %v202_v2   ;;  %305 = vperm.xlu2 %549, %v481_v3   ;;  %v780_v8 = vld [vmem:[%s168_s6] sm:$0x7f]  ;;  %v782_v10 = vld [vmem:[%s168_s6 + $0x8] sm:$0x7f]  ;;  %v784_v11 = vld [vmem:[%s168_s6 + $0x10] sm:$0x7f] }
  0x2e   : > { %v786_v12 = vld [vmem:[%s168_s6 + $0x18] sm:$0x7f]  ;;  %v788_v13 = vld [vmem:[%s168_s6 + $0x20] sm:$0x7f]  ;;  %v790_v14 = vld [vmem:[%s168_s6 + $0x28] sm:$0x7f] }
  0x2f   : > { %v308_v15 = vperm.slane %v780_v8, 4  ;;  %v309_v16 = vperm.slane %v782_v10, 4  ;;  %v310_v17 = vperm.slane %v784_v11, 4  ;;  %v311_v18 = vperm.slane %v786_v12, 4  ;;  %s398_s11 = sshll.u32 %s395_s9, 4  ;;  %s399_s11 = int_to_ptr.hbm [resolvable:$true] %s398_s11 }
  0x30   : > { %v312_v19 = vperm.slane %v788_v13, 4  ;;  %v313_v20 = vperm.slane %v790_v14, 4  ;;  %v208_v21 = vperm.slane %v780_v8, 0  ;;  %v209_v22 = vperm.slane %v782_v10, 0  ;;  %s594_s19 = sshra.s32 %s399_s11, 4  ;;  %s595_s19 = int_to_ptr.hbm [resolvable:$true] %s594_s19 }
  0x31   : > { %v210_v23 = vperm.slane %v784_v11, 0  ;;  %v211_v24 = vperm.slane %v786_v12, 0  ;;  %v258_v25 = vperm.slane %v780_v8, 2  ;;  %v259_v26 = vperm.slane %v782_v10, 2  ;;  %s596_s20 = scalar_lea.hbm %s595_s19, 48  ;;  %p601_p3 = scmp.lt.s32.totalorder %s595_s19, %s926_s3 }
  0x32   : > { %v260_v27 = vperm.slane %v784_v11, 2  ;;  %v261_v28 = vperm.slane %v786_v12, 2  ;;  %v262_v29 = vperm.slane %v788_v13, 2  ;;  %v263_v30 = vperm.slane %v790_v14, 2  ;;  %p597_p6 = scmp.ne.s32.totalorder %s595_s19, %s596_s20  ;;  %p602_p4 = scmp.lt.s32.totalorder %s600_s25, %s596_s20 }
  0x33   : > { %v212_v31 = vperm.slane %v788_v13, 0  ;;  %v213_v32 = vperm.slane %v790_v14, 0  ;;  %v333_v33 = vperm.slane %v780_v8, 5  ;;  %v334_v34 = vperm.slane %v782_v10, 5 }
  0x34   : > { %280 = vperm.xlu1 %548, %v480_v4   ;;  %v335_v35 = vperm.slane %v784_v11, 5  ;;  %v336_v36 = vperm.slane %v786_v12, 5  ;;  %v337_v37 = vperm.slane %v788_v13, 5  ;;  %v338_v38 = vperm.slane %v790_v14, 5  ;;  %v200_v4 = vld [vmem:[%s924_s1] sm:$0xff]  ;;  %p598_p13 = pnand %p597_p6, %p719_p11  ;;  %p603_p5 = por %p602_p4, %p601_p3 }
  0x35   : > { %230 = vperm.xlu0 %547, %v478_v5   ;;  %330 = vperm.xlu2 %549, %v482_v6   ;;  %v283_v39 = vperm.slane %v780_v8, 3  ;;  %v284_v40 = vperm.slane %v782_v10, 3  ;;  %v285_v41 = vperm.slane %v784_v11, 3  ;;  %v286_v42 = vperm.slane %v786_v12, 3  ;;  %v201_v5 = vld [vmem:[%s924_s1 + $0x8] sm:$0xff] }
  0x36   : > { %v287_v43 = vperm.slane %v788_v13, 3  ;;  %v233_v49 = vperm.slane %v780_v8, 1  ;;  %v234_v50 = vperm.slane %v782_v10, 1  ;;  %v235_v56 = vperm.slane %v784_v11, 1  ;;  %p599_p2 = pneg %p598_p13 }
  0x37   : > { %v236_v57 = vperm.slane %v786_v12, 1  ;;  %v237_v58 = vperm.slane %v788_v13, 1  ;;  %v238_v59 = vperm.slane %v790_v14, 1 }
  0x38   : > { %p604_p7 = pnand %p603_p5, %p599_p2 }
  0x3d   : > { %355 = vperm.xlu0 %547, %v483_v7  }
  0x87   : > { %v306_v9 = vpop.permute.xlu2 %305 }
  0x88   : > { %v822_v45 = vmul.f32 %v308_v15, %v306_v9  ;;  %v824_v46 = vmul.f32 %v309_v16, %v306_v9  ;;  %v828_v51 = vmul.f32 %v310_v17, %v306_v9  ;;  %v830_v52 = vmul.f32 %v311_v18, %v306_v9 }
  0x89   : > { %v832_v53 = vmul.f32 %v312_v19, %v306_v9  ;;  %v834_v54 = vmul.f32 %v313_v20, %v306_v9 }
  0x8f   : > { %v331_v55 = vpop.permute.xlu2 %330 }
  0x90   : > { %v844_v2 = vmul.f32 %v333_v33, %v331_v55  ;;  %v846_v3 = vmul.f32 %v334_v34, %v331_v55  ;;  %v854_v16 = vmul.f32 %v335_v35, %v331_v55  ;;  %v856_v17 = vmul.f32 %v336_v36, %v331_v55 }
  0x91   : > { %v858_v18 = vmul.f32 %v337_v37, %v331_v55  ;;  %v860_v19 = vmul.f32 %v338_v38, %v331_v55 }
  0x9e   : > { %v256_v47 = vpop.permute.xlu1 %255 }
  0x9f   : > { %v206_v48 = vpop.permute.xlu0 %205  ;;  %v264_v20 = vmul.f32 %v258_v25, %v256_v47  ;;  %v267_v33 = vmul.f32 %v261_v28, %v256_v47  ;;  %v268_v34 = vmul.f32 %v262_v29, %v256_v47  ;;  %v269_v63 = vmul.f32 %v263_v30, %v256_v47 }
  0xa0   : > { %v214_v0 = vmul.f32 %v208_v21, %v206_v48  ;;  %v215_v1 = vmul.f32 %v209_v22, %v206_v48  ;;  %v216_v6 = vmul.f32 %v210_v23, %v206_v48  ;;  %v217_v7 = vmul.f32 %v211_v24, %v206_v48 }
  0xa1   : > { %v218_v9 = vmul.f32 %v212_v31, %v206_v48  ;;  %v219_v15 = vmul.f32 %v213_v32, %v206_v48  ;;  %v265_v21 = vmul.f32 %v259_v26, %v256_v47  ;;  %v266_v22 = vmul.f32 %v260_v27, %v256_v47 }
  0xa2   : > { %v220_v62 = vadd.f32 %v214_v0, %v200_v4  ;;  %v221_v61 = vadd.f32 %v215_v1, %v201_v5  ;;  %v222_v31 = vadd.f32 %v216_v6, %v200_v4  ;;  %v223_v32 = vadd.f32 %v217_v7, %v201_v5 }
  0xa3   : > { %v224_v35 = vadd.f32 %v218_v9, %v200_v4  ;;  %v225_v48 = vadd.f32 %v219_v15, %v201_v5 }
  0xa6   : > { %v281_v23 = vpop.permute.xlu1 %280 }
  0xa7   : > { %v231_v24 = vpop.permute.xlu0 %230  ;;  %v289_v36 = vmul.f32 %v283_v39, %v281_v23  ;;  %v290_v60 = vmul.f32 %v284_v40, %v281_v23  ;;  %v291_v27 = vmul.f32 %v285_v41, %v281_v23  ;;  %v292_v28 = vmul.f32 %v286_v42, %v281_v23 }
  0xa8   : > { %v239_v37 = vmul.f32 %v233_v49, %v231_v24  ;;  %v240_v44 = vmul.f32 %v234_v50, %v231_v24  ;;  %v241_v38 = vmul.f32 %v235_v56, %v231_v24  ;;  %v242_v55 = vmul.f32 %v236_v57, %v231_v24 }
  0xa9   : > { %v243_v25 = vmul.f32 %v237_v58, %v231_v24  ;;  %v244_v26 = vmul.f32 %v238_v59, %v231_v24  ;;  %v293_v4 = vmul.f32 %v287_v43, %v281_v23  ;;  %v931_v39 = vperm.slane %v790_v14, 3 }
  0xaa   : > { %v245_v29 = vadd.f32 %v239_v37, %v220_v62  ;;  %v246_v30 = vadd.f32 %v240_v44, %v221_v61  ;;  %v247_v47 = vadd.f32 %v241_v38, %v222_v31  ;;  %v248_v0 = vadd.f32 %v242_v55, %v223_v32 }
  0xab   : > { %v249_v1 = vadd.f32 %v243_v25, %v224_v35  ;;  %v250_v6 = vadd.f32 %v244_v26, %v225_v48  ;;  %v294_v40 = vmul.f32 %v931_v39, %v281_v23  ;;  %v362_v61 = vperm.slane %v788_v13, 6 }
  0xac   : > { %v270_v49 = vadd.f32 %v264_v20, %v245_v29  ;;  %v271_v50 = vadd.f32 %v265_v21, %v246_v30  ;;  %v272_v56 = vadd.f32 %v266_v22, %v247_v47  ;;  %v273_v57 = vadd.f32 %v267_v33, %v248_v0 }
  0xad   : > { %v274_v58 = vadd.f32 %v268_v34, %v249_v1  ;;  %v275_v41 = vadd.f32 %v269_v63, %v250_v6  ;;  %v363_v62 = vperm.slane %v790_v14, 6  ;;  %v932_v21 = vperm.slane %v780_v8, 6 }
  0xae   : > { %v295_v59 = vadd.f32 %v289_v36, %v270_v49  ;;  %v296_v44 = vadd.f32 %v290_v60, %v271_v50  ;;  %v297_v5 = vadd.f32 %v291_v27, %v272_v56  ;;  %v298_v7 = vadd.f32 %v292_v28, %v273_v57 }
  0xaf   : > { %v356_v42 = vpop.permute.xlu0 %355  ;;  %v299_v43 = vadd.f32 %v293_v4, %v274_v58  ;;  %v300_v9 = vadd.f32 %v294_v40, %v275_v41  ;;  %v933_v63 = vperm.slane %v782_v10, 6  ;;  %v935_v24 = vperm.slane %v786_v12, 6 }
  0xb0   : > { %v320_v15 = vadd.f32 %v822_v45, %v295_v59  ;;  %v321_v20 = vadd.f32 %v824_v46, %v296_v44  ;;  %v364_v22 = vmul.f32 %v932_v21, %v356_v42  ;;  %v322_v60 = vadd.f32 %v828_v51, %v297_v5 }
  0xb1   : > { %v365_v33 = vmul.f32 %v933_v63, %v356_v42  ;;  %v323_v13 = vadd.f32 %v830_v52, %v298_v7  ;;  %v324_v14 = vadd.f32 %v832_v53, %v299_v43  ;;  %v325_v34 = vadd.f32 %v834_v54, %v300_v9 }
  0xb2   : > { %v345_v23 = vadd.f32 %v844_v2, %v320_v15  ;;  %v346_v45 = vadd.f32 %v846_v3, %v321_v20  ;;  %v934_v46 = vperm.slane %v784_v11, 6  ;;  %v367_v10 = vmul.f32 %v935_v24, %v356_v42 }
  0xb3   : > { %v347_v51 = vadd.f32 %v854_v16, %v322_v60  ;;  %v348_v52 = vadd.f32 %v856_v17, %v323_v13  ;;  %v349_v53 = vadd.f32 %v858_v18, %v324_v14  ;;  %v350_v54 = vadd.f32 %v860_v19, %v325_v34 }
  0xb4   : > { %v366_v8 = vmul.f32 %v934_v46, %v356_v42  ;;  %v368_v2 = vmul.f32 %v362_v61, %v356_v42  ;;  %v370_v3 = vadd.f32 %v364_v22, %v345_v23  ;;  %v371_v31 = vadd.f32 %v365_v33, %v346_v45 }
  0xb5   : > { %v369_v11 = vmul.f32 %v363_v62, %v356_v42  ;;  %v373_v12 = vadd.f32 %v367_v10, %v348_v52 }
  0xb6   : > { %v372_v32 = vadd.f32 %v366_v8, %v347_v51  ;;  %v374_v35 = vadd.f32 %v368_v2, %v349_v53  ;;  %376 = vst [vmem:[%s191_s10] sm:$0xff] %v370_v3 }
  0xb7   : > { %v375_v16 = vadd.f32 %v369_v11, %v350_v54  ;;  %377 = vst [vmem:[%s191_s10 + $0x8] sm:$0xff] %v371_v31 }
  0xb8   : > { %378 = vst [vmem:[%s191_s10 + $0x10] sm:$0xff] %v372_v32 }
  0xb9   : > { %379 = vst [vmem:[%s191_s10 + $0x18] sm:$0xff] %v373_v12 }
  0xba   : > { %380 = vst [vmem:[%s191_s10 + $0x20] sm:$0xff] %v374_v35 }
  0xbb   : > { %381 = vst [vmem:[%s191_s10 + $0x28] sm:$0xff] %v375_v16 }
  0xbc   : > { %607 = shalt.err (!%p604_p7)
}
  0xbd   : > { %s651_s28 = smov 256   ;;  %s652_s6 = smov 16  }
  0xbe   : > { %498 = dma.vmem_to_hbm [thread:$0]  (%p719_p11), %s397_s22, 768, %s399_s11, %s383_s17, %s651_s28, %s651_s28, %s652_s6  }
  0xbf PF: > { %s413_s4 = sand.u32 1, %s634_s12   ;;  %p505_p8 = pnand %p474_p9, %p723_p12 }
  0xc0   : > { %s414_s5 = scalar_lea.sflag [#allocation4], %s413_s4 }
  0xc1   : > { %p506_p10 = pneg %p505_p8 }
  0xc3   : > { %629 = dma.done.wait (%p506_p10), %s414_s5, 768  }
  0xc4   : > { %631 = vsyncadd (%p506_p10), %s414_s5, 4294966528  ;;  %p16_p0 = scmp.ge.s32.totalorder %s698_s18, 4   ;;  %s936_s12 = smov %s638_s13 }
  0xc5   : > { %s937_s13 = smov %s642_s14  ;;  %s938_s14 = smov %s710_s21 }
  0xc6   : > { %s939_s15 = smov %s698_s18  ;;  %18 = sbr.rel (!%p16_p0) target bundleno = 5 (0x5), region = 83 }
  0xcb   :  { %420 = vsyncpa [#allocation3], 1 }
  0xcc   :  { %422 = vsyncpa [#allocation3 + $0x1], 1 }
  0xcd   :  { %423 = vsyncpa [#allocation4], 1 }
  0xce   :  { %425 = vsyncpa [#allocation4 + $0x1], 1 }

</bundles_post_ra>
